<compile_context>
chip_gen: v6e
topology: v6e:2x2x1
jax: 0.10.0
libtpu: 0.0.40
codegen_flags: <defaults>
</compile_context>

<pallas_src>
import math

import jax
import jax.numpy as jnp
from jax.experimental import pallas as pl
from jax.experimental.pallas import tpu as pltpu


def _scale_kernel(inv_ref, bias_ref, x_ref, o_ref):
    # inv_ref/bias_ref: (tr, 1) f32 per-channel scale/offset (lane-broadcast).
    # x_ref: (tr, tcol) block in the input's native dtype; o_ref: same shape.
    x = x_ref[...].astype(jnp.float32)
    # Single fused multiply-add per element (instead of subtract-then-multiply).
    o_ref[...] = (x * inv_ref[...] + bias_ref[...]).astype(o_ref.dtype)


def _round_up(x, m):
    return -(-x // m) * m


def _sublanes(dtype):
    # Sub-32-bit dtypes pack along sublanes: 8 rows per vreg for 4-byte dtypes,
    # 16 for 2-byte, 32 for 1-byte.  Used for *padded* VMEM byte accounting.
    itemsize = jnp.dtype(dtype).itemsize
    return max(8, 32 // max(itemsize, 1))


_MAX_ROW_TILE = 256              # multiple of 8/16/32 -> sublane-aligned for any dtype
_DEFAULT_BLOCK_BYTES = 8 << 20   # padded (input + output) bytes per grid step
_VMEM_LIMIT_BYTES = 48 << 20     # explicit: > v5e 16MiB scoped default, < v7x 64MiB phys


def scale_forward(X, scale_list1, scale_list2, switch=1, *,
                  out_dtype=None, block_byte_budget=None,
                  min_pallas_elems=32768):
    """Pallas implementation of SCALE.forward.

    X: (C, *spatial) channel-first array.  Returns a new array of the same
    shape with each channel normalized by its corresponding [lo, hi] range.
    """
    scale_list = scale_list1 if switch == 1 else scale_list2
    C = X.shape[0]
    if C > len(scale_list):
        raise ValueError("The input channel doesn't match the range list")

    if out_dtype is None:
        # Match input dtype (halves write bytes for bf16); integer inputs
        # promote to float32, matching the float math of the reference.
        out_dtype = X.dtype if jnp.issubdtype(X.dtype, jnp.floating) else jnp.float32
    out_dtype = jnp.dtype(out_dtype)

    lo = jnp.asarray([s[0] for s in scale_list[:C]], jnp.float32).reshape(C, 1)
    hi = jnp.asarray([s[1] for s in scale_list[:C]], jnp.float32).reshape(C, 1)
    inv = 1.0 / (hi - lo)          # reciprocal-multiply (~1 ulp vs torch division)
    bias = -lo * inv               # x*inv + bias == (x - lo) / (hi - lo)
    # TODO(synk): hi == lo yields inf/NaN, same as the PyTorch reference.

    spatial = X.shape[1:]
    HW = int(math.prod(spatial)) if spatial else 1
    x2d = X.reshape(C, HW)         # contiguous, layout-preserving reshape

    # Small problems: kernel launch + grid overhead dwarfs one VPU fma/element.
    if C * HW < min_pallas_elems:
        y2d = (x2d.astype(jnp.float32) * inv + bias).astype(out_dtype)
        return y2d.reshape(X.shape)

    # ---- Row (channel) tile -------------------------------------------------
    tr = C if C <= _MAX_ROW_TILE else _MAX_ROW_TILE

    # ---- Column tile, budgeted in *padded* VMEM bytes -----------------------
    in_bytes = jnp.dtype(X.dtype).itemsize
    out_bytes = out_dtype.itemsize
    pr_in = _round_up(tr, _sublanes(X.dtype))     # sublane-padded row counts
    pr_out = _round_up(tr, _sublanes(out_dtype))
    bytes_per_col = pr_in * in_bytes + pr_out * out_bytes

    if block_byte_budget is None:
        block_byte_budget = _DEFAULT_BLOCK_BYTES

    if HW < 128:
        tcol = HW  # full-extent last dim satisfies the (8,128)-or-full rule
    else:
        tcol = (block_byte_budget // bytes_per_col // 128) * 128
        tcol = max(128, min(tcol, (HW // 128) * 128))

    row_grid = -(-C // tr)
    col_grid = -(-HW // tcol)

    # Ensure >= 2 parallel grid steps for large single-block problems so both
    # TensorCores of a megacore (v7x) can participate.
    if row_grid * col_grid == 1 and HW >= 1024:
        tcol = max(128, ((HW // 2) // 128) * 128)
        col_grid = -(-HW // tcol)

    out2d = pl.pallas_call(
        _scale_kernel,
        out_shape=jax.ShapeDtypeStruct((C, HW), out_dtype),
        grid=(row_grid, col_grid),
        in_specs=[
            pl.BlockSpec((tr, 1), lambda i, j: (i, 0)),      # inv  (per-row)
            pl.BlockSpec((tr, 1), lambda i, j: (i, 0)),      # bias (per-row)
            pl.BlockSpec((tr, tcol), lambda i, j: (i, j)),   # X slab, native dtype
        ],
        out_specs=pl.BlockSpec((tr, tcol), lambda i, j: (i, j)),
        compiler_params=pltpu.CompilerParams(
            dimension_semantics=("parallel", "parallel"),
            vmem_limit_bytes=_VMEM_LIMIT_BYTES),
    )(inv, bias, x2d)
    return out2d.reshape(X.shape)


if __name__ == "__main__":
    # Deterministic "parameters" (the module's __init__ scale lists).
    scale_list1 = [[0.0, 255.0], [10.0, 200.0], [-50.0, 50.0], [0.0, 100.0]]
    scale_list2 = [[0.0, 1.0], [0.0, 100.0], [5.0, 105.0], [-1.0, 1.0]]

    def ref(X, slist):
        C = X.shape[0]
        lo = jnp.asarray([s[0] for s in slist[:C]], jnp.float32)
        hi = jnp.asarray([s[1] for s in slist[:C]], jnp.float32)
        shp = (C,) + (1,) * (X.ndim - 1)
        return (X.astype(jnp.float32) - lo.reshape(shp)) / (hi - lo).reshape(shp)

    key = jax.random.PRNGKey(0)
    k1, k2, k3, k4 = jax.random.split(key, 4)

    # Main case: lane-dense Pallas path; single-block problem gets split into
    # 2 parallel column steps (megacore-friendly).
    X = jax.random.uniform(k1, (4, 128, 128), dtype=jnp.float32,
                           minval=-60.0, maxval=260.0)
    y1 = jax.block_until_ready(scale_forward(X, scale_list1, scale_list2, switch=1))
    y2 = jax.block_until_ready(scale_forward(X, scale_list1, scale_list2, switch=0))
    assert jnp.allclose(y1, ref(X, scale_list1), atol=1e-5, rtol=1e-5)
    assert jnp.allclose(y2, ref(X, scale_list2), atol=1e-5, rtol=1e-5)

    # Multi-step column grid (shrunken per-step byte budget -> 4 column tiles).
    y3 = jax.block_until_ready(
        scale_forward(X, scale_list1, scale_list2, switch=1,
                      block_byte_budget=256 * 1024))
    assert jnp.allclose(y3, ref(X, scale_list1), atol=1e-5, rtol=1e-5)

    # Ragged last block: HW = 1880 (not a multiple of 128) -> padded tail tile.
    Xr = jax.random.uniform(k2, (3, 20, 94), dtype=jnp.float32,
                            minval=0.0, maxval=255.0)
    yr = jax.block_until_ready(
        scale_forward(Xr, scale_list1, scale_list2, switch=1, min_pallas_elems=0))
    assert jnp.allclose(yr, ref(Xr, scale_list1), atol=1e-5, rtol=1e-5)

    # bf16 input: cast fused in the kernel, output stays bf16 (less HBM write).
    Xb = Xr.astype(jnp.bfloat16)
    yb = jax.block_until_ready(
        scale_forward(Xb, scale_list1, scale_list2, switch=0, min_pallas_elems=0))
    assert yb.dtype == jnp.bfloat16
    assert jnp.allclose(yb.astype(jnp.float32), ref(Xb, scale_list2),
                        atol=2e-2, rtol=2e-2)

    # Many-channel input: exercises the sublane-aligned row-block tiling path.
    scale_big = [[float(i), float(i) + 100.0] for i in range(300)]
    Xc = jax.random.uniform(k3, (300, 16, 32), dtype=jnp.float32,
                            minval=0.0, maxval=255.0)
    yc = jax.block_until_ready(scale_forward(Xc, scale_big, scale_big, switch=1))
    assert jnp.allclose(yc, ref(Xc, scale_big), atol=1e-5, rtol=1e-5)

    # Tiny input: plain-JAX fallback path (below the Pallas size threshold).
    Xt = jax.random.uniform(k4, (4, 16, 16), dtype=jnp.float32,
                            minval=0.0, maxval=255.0)
    yt = jax.block_until_ready(scale_forward(Xt, scale_list1, scale_list2, switch=0))
    assert jnp.allclose(yt, ref(Xt, scale_list2), atol=1e-5, rtol=1e-5)

    print("KERNEL_OK")
</pallas_src>

<mosaic_0001>
module attributes {stable_mosaic.version = 11 : i64} {
  func.func @_scale_kernel(%arg0: i32, %arg1: i32, %arg2: memref<4x1xf32, #tpu.memory_space<vmem>>, %arg3: memref<4x1xf32, #tpu.memory_space<vmem>>, %arg4: memref<4x8192xf32, #tpu.memory_space<vmem>>, %arg5: memref<4x8192xf32, #tpu.memory_space<vmem>>) attributes {dimension_semantics = [#tpu.dimension_semantics<parallel>, #tpu.dimension_semantics<parallel>], iteration_bounds = array<i64: 1, 2>, scalar_prefetch = 0 : i64, scratch_operands = 0 : i64, tpu.core_type = #tpu.core_type<tc>, window_params = [{transform_indices = @transform_0, window_bounds = array<i64: 4, 1>}, {transform_indices = @transform_1, window_bounds = array<i64: 4, 1>}, {transform_indices = @transform_2, window_bounds = array<i64: 4, 8192>}, {transform_indices = @transform_3, window_bounds = array<i64: 4, 8192>}]} {
    %c0 = arith.constant 0 : index
    %c0_0 = arith.constant 0 : index
    %0 = vector.load %arg4[%c0, %c0_0] : memref<4x8192xf32, #tpu.memory_space<vmem>>, vector<4x8192xf32>
    %c0_1 = arith.constant 0 : index
    %c0_2 = arith.constant 0 : index
    %1 = vector.load %arg2[%c0_1, %c0_2] : memref<4x1xf32, #tpu.memory_space<vmem>>, vector<4x1xf32>
    %2 = vector.broadcast %1 : vector<4x1xf32> to vector<4x8192xf32>
    %3 = arith.mulf %0, %2 : vector<4x8192xf32>
    %c0_3 = arith.constant 0 : index
    %c0_4 = arith.constant 0 : index
    %4 = vector.load %arg3[%c0_3, %c0_4] : memref<4x1xf32, #tpu.memory_space<vmem>>, vector<4x1xf32>
    %5 = vector.broadcast %4 : vector<4x1xf32> to vector<4x8192xf32>
    %6 = arith.addf %3, %5 : vector<4x8192xf32>
    %c0_5 = arith.constant 0 : index
    %c0_6 = arith.constant 0 : index
    %7 = vector.load %arg5[%c0_5, %c0_6] : memref<4x8192xf32, #tpu.memory_space<vmem>>, vector<4x8192xf32>
    tpu.vector_store %arg5[%c0_5, %c0_6], %6 {strides = array<i32>} : memref<4x8192xf32, #tpu.memory_space<vmem>>, vector<4x8192xf32>,
    return
  }
  func.func @transform_0(%arg0: i32, %arg1: i32) -> (i32, i32) {
    %c0_i32 = arith.constant 0 : i32
    %c0_i32_0 = arith.constant 0 : i32
    return %arg0, %c0_i32 : i32, i32
  }
  func.func @transform_1(%arg0: i32, %arg1: i32) -> (i32, i32) {
    %c0_i32 = arith.constant 0 : i32
    %c0_i32_0 = arith.constant 0 : i32
    return %arg0, %c0_i32 : i32, i32
  }
  func.func @transform_2(%arg0: i32, %arg1: i32) -> (i32, i32) {
    %c0_i32 = arith.constant 0 : i32
    return %arg0, %arg1 : i32, i32
  }
  func.func @transform_3(%arg0: i32, %arg1: i32) -> (i32, i32) {
    %c0_i32 = arith.constant 0 : i32
    return %arg0, %arg1 : i32, i32
  }
}

</mosaic_0001>

<bundles_post_ra>
// kernel: tpu_custom_call.1
= control target key start
LH: loop header
LB: loop body
LE: loop exit
PB: predicated region body
PF: predicated region fallthrough
CT: control target
= control target key end

     0   :  { %8 = vsyncpa [#allocation3], 0  ;;  %s1003_s0 = inlined_call_operand.vmem [shape: f32[4,1], index: 0, kind: input, shape index: {}]   ;;  %s1004_s1 = inlined_call_operand.vmem [shape: f32[4,1], index: 1, kind: input, shape index: {}]   ;;  %s1005_s2 = inlined_call_operand.hbm [shape: f32[4,16384], index: 2, kind: input, shape index: {}]   ;;  %s1006_s3 = inlined_call_operand.hbm [shape: f32[4,16384], index: 3, kind: output, shape index: {}]  }
   0x1   :  { %10 = vsyncpa [#allocation3 + $0x1], 0 }
   0x2   :  { %11 = vsyncpa [#allocation4], 0 }
   0x3   :  { %13 = vsyncpa [#allocation4 + $0x1], 0  ;;  %s744_s12 = smov 0   ;;  %s746_s13 = smov 0  }
   0x4   :  { %s748_s14 = smov 0   ;;  %s750_s15 = smov 0  }
   0x5   :  { %s752_s16 = smov 0   ;;  %s754_s17 = smov 0  }
   0x6 LB: > { %s526_s18 = sadd.s32 4294967295, %s718_s17   ;;  %s527_s19 = sadd.s32 4294967294, %s718_s17   ;;  %s718_s17 = sphi %s754_s17, %s19_s17   ;;  %s714_s16 = sphi %s752_s16, %s1018_s16   ;;  %s710_s15 = sphi %s750_s15, %s1017_s15   ;;  %s706_s14 = sphi %s748_s14, %s1016_s14   ;;  %s702_s13 = sphi %s746_s13, %s1015_s13   ;;  %s698_s12 = sphi %s744_s12, %s1014_s12  }
   0x7   : > { %s28_s20 = sadd.s32 1, %s714_s16  ;;  %s92_s21 = sadd.s32 1, %s706_s14 }
   0x8   : > { %p29_p0 = scmp.ge.s32.totalorder %s28_s20, 2  ;;  %p99_p1 = scmp.ne.s32.totalorder %s706_s14, %s702_s13 }
   0x9   : > { %p100_p2 = scmp.eq.s32.totalorder %s718_s17, 0  ;;  %p105_p3 = scmp.ne.s32.totalorder %s702_s13, %s698_s12 }
   0xa   : > { %s1020_s20 = smov (%p29_p0, %s28_s20), 0  ;;  %p106_p5 = scmp.eq.s32.totalorder %s526_s18, 0 }
   0xb   : > { %p785_p4 = por %p100_p2, %p99_p1  ;;  %s88_s23 = ssub.s32 %s714_s16, %s1020_s20 }
   0xc   : > { %p131_p6 = scmp.eq.s32.totalorder %s526_s18, 1  ;;  %p90_p7 = scmp.eq.s32.totalorder %s88_s23, 0 }
   0xd   : > { %p791_p8 = por %p106_p5, %p105_p3  ;;  %p137_p10 = scmp.eq.s32.totalorder %s527_s19, 1 }
   0xe   : > { %p795_p9 = por %p131_p6, %p99_p1  ;;  %p557_p13 = scmp.lt.s32.totalorder %s718_s17, 2 }
   0xf   : > { %s800_s26 = scalar_select %p90_p7, %s706_s14, %s92_s21  }
  0x10   : > { %p802_p11 = por %p137_p10, %p105_p3  ;;  %s171_s28 = sand.u32 1, %s706_s14  }
  0x11   : > { %s532_s29 = sshll.u32 %s171_s28, 8  ;;  %s543_s30 = sshll.u32 %s714_s16, 12 }
  0x12   : > { %s1010_s27 = scalar_select %p802_p11, 1, 0 }
  0x13   : > { %s183_s6 = scalar_lea.hbm %s1005_s2, %s543_s30  ;;  %s175_s7 = scalar_lea.vmem [#allocation2], %s532_s29 }
  0x14   : > { %s185_s8 = sshll.u32 %s175_s7, 4  ;;  %p815_p0 = pnand %p557_p13, %p785_p4  ;;  %s186_s8 = int_to_ptr.vmem [resolvable:$true] %s185_s8 }
  0x15   : > { %p535_p1 = scmp.ge.s32.totalorder %s718_s17, 1  ;;  %p190_p2 = scmp.lt.s32.totalorder %s718_s17, 3 }
  0x16   : > { %s172_s10 = scalar_lea.sflag [#allocation3], %s171_s28  ;;  %p612_p3 = pneg %p815_p0 }
  0x17   : > { %s623_s11 = scalar_lea.vmem %s186_s8, 4096  ;;  %s720_s18 = smov [#allocation2]  }
  0x18   : > { %p624_p5 = scmp.ne.s32.totalorder %s186_s8, %s623_s11  ;;  %s628_s19 = sshll.u32 %s720_s18, 4  ;;  %s629_s19 = int_to_ptr.vmem [resolvable:$false] %s628_s19 }
  0x19   : > { %s630_s21 = scalar_lea.vmem %s629_s19, 8192  ;;  %p631_p10 = scmp.lt.s32.totalorder %s186_s8, %s629_s19 }
  0x1a   : > { %p626_p6 = pnand %p624_p5, %p612_p3  ;;  %p632_p12 = scmp.lt.s32.totalorder %s630_s21, %s623_s11 }
  0x1c   : > { %p627_p7 = pneg %p626_p6  ;;  %p633_p4 = por %p632_p12, %p631_p10 }
  0x1e   : > { %p634_p13 = pnand %p633_p4, %p627_p7 }
  0x20   : > { %637 = shalt.err (!%p634_p13)
}
  0x21   : > { %552 = dma.hbm_to_vmem [thread:$0]  (!%p815_p0), %s183_s6, 4096, %s186_s8, %s172_s10  }
  0x22   : > { %p191_p11 = pnand %p535_p1, %p190_p2 }
  0x23   : > { %s830_s22 = sand.u32 (!%p191_p11), 1, %s702_s13  }
  0x24   : > { %194 = sbr.rel (%p191_p11) target bundleno = 209 (0xd1), region = 32  ;;  %s536_s23 = sshll.u32 (!%p191_p11), %s830_s22, 8 }
  0x25   : > { %s197_s28 = scalar_lea.sflag (!%p191_p11), [#allocation3], %s830_s22  ;;  %s836_s29 = scalar_lea.vmem (!%p191_p11), [#allocation2], %s536_s23 }
  0x29   : > { %689 = dma.done.wait (%p791_p8), %s197_s28, 4096  }
  0x2a   : > { %691 = vsyncadd (%p791_p8), %s197_s28, 4294963200  ;;  %v721_v0 = vmov 0   ;;  %v273_v1 = vld [vmem:[%s1003_s0] sm:$0xf]  ;;  %v722_v3 = vmov 839922192   ;;  %v281_v5 = vlaneseq }
  0x2b   : > { %609 = vset.pattern.permute.xlu0 %v721_v0  ;;  %v318_v2 = vld [vmem:[%s1004_s1] sm:$0xf]  ;;  %v279_v4 = vunpack.c.l.s4 %v722_v3  ;;  %v242_v10 = vld [vmem:[%s836_s29 + $0x8] sm:$0xff]  ;;  %v243_v11 = vld [vmem:[%s836_s29 + $0x10] sm:$0xff]  ;;  %s895_s24 = scalar_lea.vmem [#allocation5], %s536_s23  ;;  %s544_s7 = sshll.u32 %s710_s15, 12 }
  0x2c   : > { %276 = vperm.xlu0 %609, %v273_v1   ;;  %v282_v7 = vshrl.u32 %v281_v5, 7  ;;  %v241_v9 = vld [vmem:[%s836_s29] sm:$0xff]  ;;  %v244_v12 = vld [vmem:[%s836_s29 + $0x18] sm:$0xff]  ;;  %v246_v14 = vld [vmem:[%s836_s29 + $0x28] sm:$0xff]  ;;  %s412_s8 = sshll.u32 %s895_s24, 4  ;;  %s950_s10 = scalar_lea.hbm %s1006_s3, %s544_s7  ;;  %s952_s8 = int_to_ptr.vmem [resolvable:$true] %s412_s8 }
  0x2d   : > { %v280_v6 = vunpack.c.0.s8 %v279_v4  ;;  %v245_v13 = vld [vmem:[%s836_s29 + $0x20] sm:$0xff]  ;;  %v247_v15 = vld [vmem:[%s836_s29 + $0x30] sm:$0xff]  ;;  %v248_v17 = vld [vmem:[%s836_s29 + $0x38] sm:$0xff]  ;;  %s396_s11 = scalar_lea.sflag [#allocation4], %s830_s22  ;;  %s638_s18 = scalar_lea.vmem %s952_s8, 4096 }
  0x2e   : > { %v249_v18 = vld [vmem:[%s836_s29 + $0x40] sm:$0xff]  ;;  %v250_v19 = vld [vmem:[%s836_s29 + $0x48] sm:$0xff]  ;;  %v251_v21 = vld [vmem:[%s836_s29 + $0x50] sm:$0xff]  ;;  %p639_p8 = scmp.ne.s32.totalorder %s952_s8, %s638_s18  ;;  %s723_s19 = smov [#allocation5]  }
  0x2f   : > { %v283_v8 = vsub.s32 %v280_v6, %v282_v7  ;;  %v252_v22 = vld [vmem:[%s836_s29 + $0x58] sm:$0xff]  ;;  %v253_v23 = vld [vmem:[%s836_s29 + $0x60] sm:$0xff]  ;;  %v254_v24 = vld [vmem:[%s836_s29 + $0x68] sm:$0xff]  ;;  %s642_s21 = sshll.u32 %s723_s19, 4  ;;  %s643_s21 = int_to_ptr.vmem [resolvable:$false] %s642_s21 }
  0x30   : > { %321 = vperm.xlu0 %609, %v318_v2   ;;  %v255_v25 = vld [vmem:[%s836_s29 + $0x70] sm:$0xff]  ;;  %v256_v26 = vld [vmem:[%s836_s29 + $0x78] sm:$0xff]  ;;  %v257_v27 = vld [vmem:[%s836_s29 + $0x80] sm:$0xff]  ;;  %p640_p11 = pnand %p639_p8, %p795_p9  ;;  %s644_s23 = scalar_lea.vmem %s643_s21, 8192 }
  0x31   : > { %v258_v28 = vld [vmem:[%s836_s29 + $0x88] sm:$0xff]  ;;  %v259_v29 = vld [vmem:[%s836_s29 + $0x90] sm:$0xff]  ;;  %v260_v35 = vld [vmem:[%s836_s29 + $0x98] sm:$0xff]  ;;  %p645_p0 = scmp.lt.s32.totalorder %s952_s8, %s643_s21  ;;  %p646_p1 = scmp.lt.s32.totalorder %s644_s23, %s638_s18 }
  0x32   : > { %v261_v36 = vld [vmem:[%s836_s29 + $0xa0] sm:$0xff]  ;;  %v262_v37 = vld [vmem:[%s836_s29 + $0xa8] sm:$0xff]  ;;  %v263_v43 = vld [vmem:[%s836_s29 + $0xb0] sm:$0xff]  ;;  %p641_p12 = pneg %p640_p11 }
  0x33   : > { %v264_v44 = vld [vmem:[%s836_s29 + $0xb8] sm:$0xff]  ;;  %v265_v45 = vld [vmem:[%s836_s29 + $0xc0] sm:$0xff]  ;;  %v266_v49 = vld [vmem:[%s836_s29 + $0xc8] sm:$0xff]  ;;  %p647_p2 = por %p646_p1, %p645_p0 }
  0x34   : > { %v267_v50 = vld [vmem:[%s836_s29 + $0xd0] sm:$0xff]  ;;  %v268_v51 = vld [vmem:[%s836_s29 + $0xd8] sm:$0xff]  ;;  %v269_v56 = vld [vmem:[%s836_s29 + $0xe0] sm:$0xff] }
  0x35   : > { %v270_v57 = vld [vmem:[%s836_s29 + $0xe8] sm:$0xff]  ;;  %v271_v58 = vld [vmem:[%s836_s29 + $0xf0] sm:$0xff]  ;;  %v272_v63 = vld [vmem:[%s836_s29 + $0xf8] sm:$0xff]  ;;  %p648_p3 = pnand %p647_p2, %p641_p12 }
  0xa7   : > { %v277_v16 = vpop.permute.xlu0 %276 }
  0xa8   : > { %v284_v20 = vrot.slane %v277_v16, %v283_v8 }
  0xaa   : > { %v286_v30 = vmul.f32 %v284_v20, %v241_v9  ;;  %v287_v31 = vmul.f32 %v284_v20, %v242_v10  ;;  %v288_v32 = vmul.f32 %v284_v20, %v243_v11  ;;  %v289_v33 = vmul.f32 %v284_v20, %v244_v12 }
  0xab   : > { %v322_v34 = vpop.permute.xlu0 %321  ;;  %v290_v38 = vmul.f32 %v284_v20, %v245_v13  ;;  %v291_v39 = vmul.f32 %v284_v20, %v246_v14  ;;  %v292_v40 = vmul.f32 %v284_v20, %v247_v15  ;;  %v293_v41 = vmul.f32 %v284_v20, %v248_v17 }
  0xac   : > { %v870_v42 = vrot.slane %v322_v34, %v283_v8  ;;  %v294_v46 = vmul.f32 %v284_v20, %v249_v18  ;;  %v295_v47 = vmul.f32 %v284_v20, %v250_v19  ;;  %v296_v48 = vmul.f32 %v284_v20, %v251_v21 }
  0xad   : > { %v297_v52 = vmul.f32 %v284_v20, %v252_v22  ;;  %v298_v53 = vmul.f32 %v284_v20, %v253_v23  ;;  %v299_v54 = vmul.f32 %v284_v20, %v254_v24  ;;  %v300_v55 = vmul.f32 %v284_v20, %v255_v25 }
  0xae   : > { %v301_v59 = vmul.f32 %v284_v20, %v256_v26  ;;  %v302_v60 = vmul.f32 %v284_v20, %v257_v27  ;;  %v303_v61 = vmul.f32 %v284_v20, %v258_v28  ;;  %v304_v62 = vmul.f32 %v284_v20, %v259_v29 }
  0xaf   : > { %v305_v0 = vmul.f32 %v284_v20, %v260_v35  ;;  %v306_v1 = vmul.f32 %v284_v20, %v261_v36  ;;  %v307_v2 = vmul.f32 %v284_v20, %v262_v37  ;;  %v308_v3 = vmul.f32 %v284_v20, %v263_v43 }
  0xb0   : > { %v309_v4 = vmul.f32 %v284_v20, %v264_v44  ;;  %v310_v5 = vmul.f32 %v284_v20, %v265_v45  ;;  %v311_v6 = vmul.f32 %v284_v20, %v266_v49  ;;  %v312_v7 = vmul.f32 %v284_v20, %v267_v50 }
  0xb1   : > { %v313_v8 = vmul.f32 %v284_v20, %v268_v51  ;;  %v314_v9 = vmul.f32 %v284_v20, %v269_v56  ;;  %v315_v10 = vmul.f32 %v284_v20, %v270_v57  ;;  %v316_v11 = vmul.f32 %v284_v20, %v271_v58 }
  0xb2   : > { %v317_v12 = vmul.f32 %v284_v20, %v272_v63  ;;  %v331_v13 = vadd.f32 %v870_v42, %v286_v30  ;;  %v332_v14 = vadd.f32 %v870_v42, %v287_v31  ;;  %v333_v15 = vadd.f32 %v870_v42, %v288_v32 }
  0xb3   : > { %v334_v16 = vadd.f32 %v870_v42, %v289_v33  ;;  %v335_v17 = vadd.f32 %v870_v42, %v290_v38  ;;  %v336_v18 = vadd.f32 %v870_v42, %v291_v39  ;;  %v337_v19 = vadd.f32 %v870_v42, %v292_v40 }
  0xb4   : > { %v338_v21 = vadd.f32 %v870_v42, %v293_v41  ;;  %v339_v22 = vadd.f32 %v870_v42, %v294_v46  ;;  %v340_v20 = vadd.f32 %v870_v42, %v295_v47  ;;  %v341_v23 = vadd.f32 %v870_v42, %v296_v48  ;;  %363 = vst [vmem:[%s895_s24] sm:$0xff] %v331_v13 }
  0xb5   : > { %364 = vst [vmem:[%s895_s24 + $0x8] sm:$0xff] %v332_v14  ;;  %365 = vst [vmem:[%s895_s24 + $0x10] sm:$0xff] %v333_v15  ;;  %v342_v24 = vadd.f32 %v870_v42, %v297_v52  ;;  %v343_v25 = vadd.f32 %v870_v42, %v298_v53  ;;  %v344_v26 = vadd.f32 %v870_v42, %v299_v54 }
  0xb6   : > { %v345_v27 = vadd.f32 %v870_v42, %v300_v55  ;;  %366 = vst [vmem:[%s895_s24 + $0x18] sm:$0xff] %v334_v16  ;;  %367 = vst [vmem:[%s895_s24 + $0x20] sm:$0xff] %v335_v17  ;;  %v346_v28 = vadd.f32 %v870_v42, %v301_v59  ;;  %v347_v29 = vadd.f32 %v870_v42, %v302_v60 }
  0xb7   : > { %368 = vst [vmem:[%s895_s24 + $0x28] sm:$0xff] %v336_v18  ;;  %369 = vst [vmem:[%s895_s24 + $0x30] sm:$0xff] %v337_v19  ;;  %v348_v30 = vadd.f32 %v870_v42, %v303_v61  ;;  %v349_v31 = vadd.f32 %v870_v42, %v304_v62  ;;  %v350_v32 = vadd.f32 %v870_v42, %v305_v0 }
  0xb8   : > { %370 = vst [vmem:[%s895_s24 + $0x38] sm:$0xff] %v338_v21  ;;  %371 = vst [vmem:[%s895_s24 + $0x40] sm:$0xff] %v339_v22  ;;  %v351_v33 = vadd.f32 %v870_v42, %v306_v1  ;;  %v352_v34 = vadd.f32 %v870_v42, %v307_v2  ;;  %v353_v35 = vadd.f32 %v870_v42, %v308_v3 }
  0xb9   : > { %372 = vst [vmem:[%s895_s24 + $0x48] sm:$0xff] %v340_v20  ;;  %373 = vst [vmem:[%s895_s24 + $0x50] sm:$0xff] %v341_v23  ;;  %v354_v36 = vadd.f32 %v870_v42, %v309_v4  ;;  %v355_v37 = vadd.f32 %v870_v42, %v310_v5  ;;  %v356_v38 = vadd.f32 %v870_v42, %v311_v6 }
  0xba   : > { %374 = vst [vmem:[%s895_s24 + $0x58] sm:$0xff] %v342_v24  ;;  %375 = vst [vmem:[%s895_s24 + $0x60] sm:$0xff] %v343_v25  ;;  %v357_v39 = vadd.f32 %v870_v42, %v312_v7  ;;  %v358_v40 = vadd.f32 %v870_v42, %v313_v8  ;;  %v359_v41 = vadd.f32 %v870_v42, %v314_v9 }
  0xbb   : > { %376 = vst [vmem:[%s895_s24 + $0x68] sm:$0xff] %v344_v26  ;;  %377 = vst [vmem:[%s895_s24 + $0x70] sm:$0xff] %v345_v27  ;;  %v360_v43 = vadd.f32 %v870_v42, %v315_v10  ;;  %v361_v44 = vadd.f32 %v870_v42, %v316_v11  ;;  %v362_v45 = vadd.f32 %v870_v42, %v317_v12 }
  0xbc   : > { %378 = vst [vmem:[%s895_s24 + $0x78] sm:$0xff] %v346_v28  ;;  %379 = vst [vmem:[%s895_s24 + $0x80] sm:$0xff] %v347_v29 }
  0xbd   : > { %380 = vst [vmem:[%s895_s24 + $0x88] sm:$0xff] %v348_v30  ;;  %381 = vst [vmem:[%s895_s24 + $0x90] sm:$0xff] %v349_v31 }
  0xbe   : > { %382 = vst [vmem:[%s895_s24 + $0x98] sm:$0xff] %v350_v32  ;;  %383 = vst [vmem:[%s895_s24 + $0xa0] sm:$0xff] %v351_v33 }
  0xbf   : > { %384 = vst [vmem:[%s895_s24 + $0xa8] sm:$0xff] %v352_v34  ;;  %385 = vst [vmem:[%s895_s24 + $0xb0] sm:$0xff] %v353_v35 }
  0xc0   : > { %386 = vst [vmem:[%s895_s24 + $0xb8] sm:$0xff] %v354_v36  ;;  %387 = vst [vmem:[%s895_s24 + $0xc0] sm:$0xff] %v355_v37 }
  0xc1   : > { %388 = vst [vmem:[%s895_s24 + $0xc8] sm:$0xff] %v356_v38  ;;  %389 = vst [vmem:[%s895_s24 + $0xd0] sm:$0xff] %v357_v39 }
  0xc2   : > { %390 = vst [vmem:[%s895_s24 + $0xd8] sm:$0xff] %v358_v40  ;;  %391 = vst [vmem:[%s895_s24 + $0xe0] sm:$0xff] %v359_v41 }
  0xc3   : > { %392 = vst [vmem:[%s895_s24 + $0xe8] sm:$0xff] %v360_v43  ;;  %393 = vst [vmem:[%s895_s24 + $0xf0] sm:$0xff] %v361_v44 }
  0xc4   : > { %394 = vst [vmem:[%s895_s24 + $0xf8] sm:$0xff] %v362_v45 }
  0xc5   : > { %651 = shalt.err (!%p648_p3)
}
  0xc6   : > { %s652_s28 = scalar_lea.hbm %s950_s10, 4096  ;;  %s656_s30 = scalar_lea.hbm %s1006_s3, 8192 }
  0xc7   : > { %p653_p5 = scmp.ne.s32.totalorder %s950_s10, %s652_s28  ;;  %p657_p10 = scmp.lt.s32.totalorder %s950_s10, %s1006_s3 }
  0xc8   : > { %p658_p4 = scmp.lt.s32.totalorder %s656_s30, %s652_s28 }
  0xc9   : > { %p654_p6 = pnand %p653_p5, %p795_p9 }
  0xca   : > { %p659_p13 = por %p658_p4, %p657_p10 }
  0xcb   : > { %p655_p7 = pneg %p654_p6 }
  0xcd   : > { %p660_p8 = pnand %p659_p13, %p655_p7 }
  0xcf   : > { %663 = shalt.err (!%p660_p8)
}
  0xd0   : > { %547 = dma.vmem_to_hbm [thread:$0]  (%p795_p9), %s952_s8, 4096, %s950_s10, %s396_s11  }
  0xd1 PF: > { %s424_s6 = sand.u32 1, %s698_s12   ;;  %p1012_p11 = scmp.ne.s32.totalorder %s1010_s27, 0 }
  0xd2   : > { %p1013_p12 = scmp.ge.s32.totalorder %s718_s17, 2  ;;  %s425_s24 = scalar_lea.sflag [#allocation4], %s424_s6 }
  0xd4   : > { %p554_p0 = pnand %p1013_p12, %p1012_p11 }
  0xd6   : > { %p555_p1 = pneg %p554_p0 }
  0xd8   : > { %693 = dma.done.wait (%p555_p1), %s425_s24, 4096  }
  0xd9   : > { %695 = vsyncadd (%p555_p1), %s425_s24, 4294963200  ;;  %s19_s17 = sadd.s32 1, %s718_s17   ;;  %s1014_s12 = smov %s702_s13 }
  0xda   : > { %p16_p2 = scmp.ge.s32.totalorder %s19_s17, 4   ;;  %s1015_s13 = smov %s706_s14 }
  0xdb   : > { %s1016_s14 = smov %s800_s26  ;;  %s1017_s15 = smov %s714_s16 }
  0xdc   : > { %s1018_s16 = smov %s1020_s20  ;;  %18 = sbr.rel (!%p16_p2) target bundleno = 6 (0x6), region = 83 }
  0xe1   :  { %430 = vsyncpa [#allocation3], 1 }
  0xe2   :  { %432 = vsyncpa [#allocation3 + $0x1], 1 }
  0xe3   :  { %433 = vsyncpa [#allocation4], 1 }
  0xe4   :  { %435 = vsyncpa [#allocation4 + $0x1], 1 }

</bundles_post_ra>
